<compile_context>
chip_gen: v7x
topology: tpu7x:2x2x1
jax: 0.10.0
libtpu: 0.0.40
codegen_flags: <defaults>
</compile_context>

<pallas_src>
import functools

import jax
import jax.numpy as jnp
from jax.experimental import pallas as pl
from jax.experimental.pallas import tpu as pltpu


def _convlstm_kernel(p_ref, w_ref, b_ref, c_ref, h_out_ref, c_out_ref, *, hid):
    # p_ref : (Kp, TM)     transposed im2col patches (matmul dtype, zero-pad rows)
    # w_ref : (4*hid, Kp)  transposed flattened conv weight (matmul dtype)
    # b_ref : (4*hid, 1)   conv bias, float32 (added post-matmul: full precision)
    # c_ref : (hid, TM)    transposed current cell state, float32
    # Single MXU matmul over the fused k*k*C contraction; f32 accumulation.
    acc = jnp.dot(w_ref[...], p_ref[...], preferred_element_type=jnp.float32)
    acc = acc + b_ref[...]                       # f32 bias broadcast over lanes

    # Consolidated nonlinearities: one sigmoid over [i|f|o] rows, one tanh for g.
    sig = jax.nn.sigmoid(acc[: 3 * hid, :])
    g = jnp.tanh(acc[3 * hid:, :])
    i = sig[0 * hid: 1 * hid, :]
    f = sig[1 * hid: 2 * hid, :]
    o = sig[2 * hid: 3 * hid, :]

    c_cur = c_ref[...].astype(jnp.float32)
    c_next = f * c_cur + i * g
    h_next = o * jnp.tanh(c_next)

    # Full-width (hid, TM) stores: single unmasked vst pass per output.
    h_out_ref[...] = h_next.astype(h_out_ref.dtype)
    c_out_ref[...] = c_next.astype(c_out_ref.dtype)


def _choose_tile_m(m128, per_col_bytes, *, block_budget_bytes, max_tile):
    """Largest 128-multiple lane tile whose pipelined blocks fit the budget."""
    cap = (block_budget_bytes // per_col_bytes) // 128 * 128
    cap = max(128, min(cap, max_tile))
    tile = min(cap, m128)
    # Prefer >= 2 grid steps so ("parallel",) can split work across the two
    # v7x TensorCores; harmless sequential loop on single-TC generations.
    if tile == m128 and m128 >= 256:
        tile = max(128, (m128 // 2) // 128 * 128)
    return tile


def convlstm_cell(x, h, c, w, b, *, kernel_size,
                  matmul_dtype=jnp.bfloat16,
                  max_tile_m=512,
                  block_budget_bytes=12 * 1024 * 1024,
                  vmem_limit_bytes=48 * 1024 * 1024):
    """One ConvLSTM cell step.

    x: (B, H, W, Cin) float32
    h, c: (B, H, W, hid) float32
    w: (k, k, Cin+hid, 4*hid) float32   (HWIO, gates ordered [i,f,o,g])
    b: (4*hid,) float32
    matmul_dtype: bfloat16 (default; native MXU rate, f32 accumulation) or
                  float32 for bit-faithful conv pre-activations.
    returns (h_next, c_next), each (B, H, W, hid)
    """
    B, H, W, Cin = x.shape
    hid = h.shape[-1]
    k = kernel_size
    p = k // 2
    C = Cin + hid
    M = B * H * W
    K = k * k * C

    mm_bytes = jnp.dtype(matmul_dtype).itemsize
    pack = max(1, 4 // mm_bytes) * 8           # sublane pack: 8 (f32) / 16 (bf16)
    Kp = ((K + pack - 1) // pack) * pack       # pad contraction rows (zeros)

    # ---- size-aware lane tiling over M = B*H*W -----------------------------
    m128 = ((M + 127) // 128) * 128
    # VMEM bytes per lane column across pipelined blocks:
    #   2x patch buffers + 2x f32 c-input buffers + 2x2 f32 output buffers.
    per_col = 2 * Kp * mm_bytes + (2 + 2 + 2) * hid * 4
    tile_m = _choose_tile_m(m128, per_col,
                            block_budget_bytes=block_budget_bytes,
                            max_tile=max_tile_m)
    M_pad = ((M + tile_m - 1) // tile_m) * tile_m
    grid = (M_pad // tile_m,)

    # ---- channel-major im2col: build patches directly as (K, M) ------------
    # Row order is (dy, dx, c) with c fastest — matches w.reshape(K, 4*hid).
    conc = jnp.concatenate([x, h], axis=-1)                   # (B, H, W, C)
    conc_cm = jnp.transpose(conc, (3, 0, 1, 2))               # (C, B, H, W)
    conc_cm = jnp.pad(conc_cm, ((0, 0), (0, 0), (p, p), (p, p)))
    taps = [conc_cm[:, :, dy:dy + H, dx:dx + W].reshape(C, M)
            for dy in range(k) for dx in range(k)]
    patches_t = jnp.concatenate(taps, axis=0)                 # (K, M)
    patches_t = jnp.pad(patches_t,
                        ((0, Kp - K), (0, M_pad - M))).astype(matmul_dtype)

    # Transposed flattened conv weight (4*hid, Kp); bias kept separate in f32.
    w_t = jnp.pad(w.reshape(K, 4 * hid).T,
                  ((0, 0), (0, Kp - K))).astype(matmul_dtype)
    b_t = b.reshape(4 * hid, 1).astype(jnp.float32)

    # Channel-major cell state (hid, M_pad), float32.
    c_t = jnp.pad(jnp.transpose(c, (3, 0, 1, 2)).reshape(hid, M),
                  ((0, 0), (0, M_pad - M)))

    kern = functools.partial(_convlstm_kernel, hid=hid)
    out_shape = (jax.ShapeDtypeStruct((hid, M_pad), x.dtype),
                 jax.ShapeDtypeStruct((hid, M_pad), x.dtype))

    # NOTE: the weight/bias index maps are constant; pl.Buffered(1) on their
    # specs would drop one redundant buffer (~4*hid*Kp bytes) — negligible at
    # these sizes, so the default double-buffering is kept for robustness.
    h_t, c_next_t = pl.pallas_call(
        kern,
        out_shape=out_shape,
        grid=grid,
        in_specs=[
            pl.BlockSpec((Kp, tile_m), lambda m: (0, m)),       # patches (stream)
            pl.BlockSpec((4 * hid, Kp), lambda m: (0, 0)),      # weight (resident)
            pl.BlockSpec((4 * hid, 1), lambda m: (0, 0)),       # bias (f32)
            pl.BlockSpec((hid, tile_m), lambda m: (0, m)),      # cell state
        ],
        out_specs=(
            pl.BlockSpec((hid, tile_m), lambda m: (0, m)),
            pl.BlockSpec((hid, tile_m), lambda m: (0, m)),
        ),
        compiler_params=pltpu.CompilerParams(
            dimension_semantics=("parallel",),
            vmem_limit_bytes=vmem_limit_bytes),
    )(patches_t, w_t, b_t, c_t)

    h_next = h_t[:, :M].T.reshape(B, H, W, hid)
    c_next = c_next_t[:, :M].T.reshape(B, H, W, hid)
    return h_next, c_next


def convlstm_cell_ref(x, h, c, w, b):
    """Pure-JAX reference (matches PyTorch forward semantics, NHWC layout)."""
    hid = h.shape[-1]
    conc = jnp.concatenate([x, h], axis=-1)
    conv = jax.lax.conv_general_dilated(
        conc, w, window_strides=(1, 1), padding="SAME",
        dimension_numbers=("NHWC", "HWIO", "NHWC"))
    conv = conv + b
    i = jax.nn.sigmoid(conv[..., 0 * hid:1 * hid])
    f = jax.nn.sigmoid(conv[..., 1 * hid:2 * hid])
    o = jax.nn.sigmoid(conv[..., 2 * hid:3 * hid])
    g = jnp.tanh(conv[..., 3 * hid:4 * hid])
    c_next = f * c + i * g
    h_next = o * jnp.tanh(c_next)
    return h_next, c_next


if __name__ == "__main__":
    # Mirrors ConvLSTM_Cell(input_dim=4, hidden_dim=32, kernel_size=3, bias=True)
    B, Cin, H, W = 2, 4, 16, 16
    hid, k = 32, 3

    key = jax.random.PRNGKey(0)
    kx, kh, kc, kw, kb = jax.random.split(key, 5)

    x = jax.random.normal(kx, (B, H, W, Cin), jnp.float32)
    h0 = jax.random.normal(kh, (B, H, W, hid), jnp.float32)
    c0 = jax.random.normal(kc, (B, H, W, hid), jnp.float32)

    # Synthetic parameters (shapes as nn.Conv2d(Cin+hid, 4*hid, k), HWIO layout)
    w = 0.05 * jax.random.normal(kw, (k, k, Cin + hid, 4 * hid), jnp.float32)
    b = 0.01 * jax.random.normal(kb, (4 * hid,), jnp.float32)

    h_ref, c_ref = convlstm_cell_ref(x, h0, c0, w, b)

    # Default fast path: bf16 MXU inputs, f32 accumulation / bias / state.
    h_bf, c_bf = convlstm_cell(x, h0, c0, w, b, kernel_size=k)
    jax.block_until_ready((h_bf, c_bf))
    assert jnp.allclose(h_bf, h_ref, atol=5e-2, rtol=5e-2), "hidden mismatch (bf16)"
    assert jnp.allclose(c_bf, c_ref, atol=5e-2, rtol=5e-2), "cell mismatch (bf16)"

    # Full-precision path: same kernel with f32 matmul inputs, tight tolerance.
    h_f32, c_f32 = convlstm_cell(x, h0, c0, w, b, kernel_size=k,
                                 matmul_dtype=jnp.float32)
    jax.block_until_ready((h_f32, c_f32))
    assert jnp.allclose(h_f32, h_ref, atol=1e-4, rtol=1e-4), "hidden mismatch (f32)"
    assert jnp.allclose(c_f32, c_ref, atol=1e-4, rtol=1e-4), "cell mismatch (f32)"

    print("KERNEL_OK")
</pallas_src>

<mosaic_0001>
module attributes {stable_mosaic.version = 11 : i64} {
  func.func @_convlstm_kernel(%arg0: i32, %arg1: memref<336x256xbf16, #tpu.memory_space<vmem>>, %arg2: memref<128x336xbf16, #tpu.memory_space<vmem>>, %arg3: memref<128x1xf32, #tpu.memory_space<vmem>>, %arg4: memref<32x256xf32, #tpu.memory_space<vmem>>, %arg5: memref<32x256xf32, #tpu.memory_space<vmem>>, %arg6: memref<32x256xf32, #tpu.memory_space<vmem>>) attributes {dimension_semantics = [#tpu.dimension_semantics<parallel>], iteration_bounds = array<i64: 2>, scalar_prefetch = 0 : i64, scratch_operands = 0 : i64, tpu.core_type = #tpu.core_type<tc>, window_params = [{transform_indices = @transform_0, window_bounds = array<i64: 336, 256>}, {pipeline_mode = #tpu.pipeline_mode<synchronous>, transform_indices = @transform_1, window_bounds = array<i64: 128, 336>}, {pipeline_mode = #tpu.pipeline_mode<synchronous>, transform_indices = @transform_2, window_bounds = array<i64: 128, 1>}, {transform_indices = @transform_3, window_bounds = array<i64: 32, 256>}, {transform_indices = @transform_4, window_bounds = array<i64: 32, 256>}, {transform_indices = @transform_5, window_bounds = array<i64: 32, 256>}]} {
    %c0 = arith.constant 0 : index
    %c0_0 = arith.constant 0 : index
    %0 = vector.load %arg2[%c0, %c0_0] : memref<128x336xbf16, #tpu.memory_space<vmem>>, vector<128x336xbf16>
    %c0_1 = arith.constant 0 : index
    %c0_2 = arith.constant 0 : index
    %1 = vector.load %arg1[%c0_1, %c0_2] : memref<336x256xbf16, #tpu.memory_space<vmem>>, vector<336x256xbf16>
    %cst = arith.constant dense<0.000000e+00> : vector<128x256xf32>
    %2 = tpu.matmul %0, %1, %cst {dimension_numbers = #tpu.dot_dimension_numbers<[1], [0], [0], [1], [0, 0, 1, 1], [], []>} : vector<128x336xbf16>, vector<336x256xbf16>, vector<128x256xf32> -> vector<128x256xf32>
    %c0_3 = arith.constant 0 : index
    %c0_4 = arith.constant 0 : index
    %3 = vector.load %arg3[%c0_3, %c0_4] : memref<128x1xf32, #tpu.memory_space<vmem>>, vector<128x1xf32>
    %4 = vector.broadcast %3 : vector<128x1xf32> to vector<128x256xf32>
    %5 = arith.addf %2, %4 : vector<128x256xf32>
    %6 = vector.extract_strided_slice %5 {offsets = [0, 0], sizes = [96, 256], strides = [1, 1]} : vector<128x256xf32> to vector<96x256xf32>
    %7 = arith.negf %6 : vector<96x256xf32>
    %8 = math.exp %7 : vector<96x256xf32>
    %cst_5 = arith.constant 1.000000e+00 : f32
    %9 = vector.broadcast %cst_5 : f32 to vector<96x256xf32>
    %10 = arith.addf %9, %8 : vector<96x256xf32>
    %11 = arith.divf %9, %10 : vector<96x256xf32>
    %12 = vector.extract_strided_slice %5 {offsets = [96, 0], sizes = [32, 256], strides = [1, 1]} : vector<128x256xf32> to vector<32x256xf32>
    %13 = math.tanh %12 : vector<32x256xf32>
    %14 = vector.extract_strided_slice %11 {offsets = [0, 0], sizes = [32, 256], strides = [1, 1]} : vector<96x256xf32> to vector<32x256xf32>
    %15 = vector.extract_strided_slice %11 {offsets = [32, 0], sizes = [32, 256], strides = [1, 1]} : vector<96x256xf32> to vector<32x256xf32>
    %16 = vector.extract_strided_slice %11 {offsets = [64, 0], sizes = [32, 256], strides = [1, 1]} : vector<96x256xf32> to vector<32x256xf32>
    %c0_6 = arith.constant 0 : index
    %c0_7 = arith.constant 0 : index
    %17 = vector.load %arg4[%c0_6, %c0_7] : memref<32x256xf32, #tpu.memory_space<vmem>>, vector<32x256xf32>
    %18 = arith.mulf %15, %17 : vector<32x256xf32>
    %19 = arith.mulf %14, %13 : vector<32x256xf32>
    %20 = arith.addf %18, %19 : vector<32x256xf32>
    %21 = math.tanh %20 : vector<32x256xf32>
    %22 = arith.mulf %16, %21 : vector<32x256xf32>
    %c0_8 = arith.constant 0 : index
    %c0_9 = arith.constant 0 : index
    %23 = vector.load %arg5[%c0_8, %c0_9] : memref<32x256xf32, #tpu.memory_space<vmem>>, vector<32x256xf32>
    tpu.vector_store %arg5[%c0_8, %c0_9], %22 {strides = array<i32>} : memref<32x256xf32, #tpu.memory_space<vmem>>, vector<32x256xf32>,
    %c0_10 = arith.constant 0 : index
    %c0_11 = arith.constant 0 : index
    %24 = vector.load %arg6[%c0_10, %c0_11] : memref<32x256xf32, #tpu.memory_space<vmem>>, vector<32x256xf32>
    tpu.vector_store %arg6[%c0_10, %c0_11], %20 {strides = array<i32>} : memref<32x256xf32, #tpu.memory_space<vmem>>, vector<32x256xf32>,
    return
  }
  func.func @transform_0(%arg0: i32) -> (i32, i32) {
    %c0_i32 = arith.constant 0 : i32
    %c0_i32_0 = arith.constant 0 : i32
    return %c0_i32, %arg0 : i32, i32
  }
  func.func @transform_1(%arg0: i32) -> (i32, i32) {
    %c0_i32 = arith.constant 0 : i32
    %c0_i32_0 = arith.constant 0 : i32
    %c0_i32_1 = arith.constant 0 : i32
    return %c0_i32, %c0_i32_0 : i32, i32
  }
  func.func @transform_2(%arg0: i32) -> (i32, i32) {
    %c0_i32 = arith.constant 0 : i32
    %c0_i32_0 = arith.constant 0 : i32
    %c0_i32_1 = arith.constant 0 : i32
    return %c0_i32, %c0_i32_0 : i32, i32
  }
  func.func @transform_3(%arg0: i32) -> (i32, i32) {
    %c0_i32 = arith.constant 0 : i32
    %c0_i32_0 = arith.constant 0 : i32
    return %c0_i32, %arg0 : i32, i32
  }
  func.func @transform_4(%arg0: i32) -> (i32, i32) {
    %c0_i32 = arith.constant 0 : i32
    %c0_i32_0 = arith.constant 0 : i32
    return %c0_i32, %arg0 : i32, i32
  }
  func.func @transform_5(%arg0: i32) -> (i32, i32) {
    %c0_i32 = arith.constant 0 : i32
    %c0_i32_0 = arith.constant 0 : i32
    return %c0_i32, %arg0 : i32, i32
  }
}

</mosaic_0001>

<bundles_post_ra>
// kernel: tpu_custom_call.1
= control target key start
LH: loop header
LB: loop body
LE: loop exit
PB: predicated region body
PF: predicated region fallthrough
CT: control target
= control target key end

     0   :  { %11 = vsyncpa [#allocation3], 0  ;;  %s2607_s0 = inlined_call_operand.hbm [shape: bf16[336,512], index: 0, kind: input, shape index: {}]   ;;  %s2608_s1 = inlined_call_operand.vmem [shape: bf16[128,336], index: 1, kind: input, shape index: {}]   ;;  %s2609_s2 = inlined_call_operand.vmem [shape: f32[128,1], index: 2, kind: input, shape index: {}]   ;;  %s2610_s3 = inlined_call_operand.vmem [shape: f32[32,512], index: 3, kind: input, shape index: {}]   ;;  %s2611_s4 = inlined_call_operand.hbm [shape: f32[32,512], index: 4, kind: output, shape index: {0}]   ;;  %s2612_s5 = inlined_call_operand.hbm [shape: f32[32,512], index: 5, kind: output, shape index: {1}]  }
   0x1   :  { %13 = vsyncpa [#allocation3 + $0x1], 0 }
   0x2   :  { %14 = vsyncpa [#allocation4], 0 }
   0x3   :  { %16 = vsyncpa [#allocation4 + $0x1], 0 }
   0x4   :  { %17 = vsyncpa [#allocation8], 0 }
   0x5   :  { %19 = vsyncpa [#allocation8 + $0x1], 0  ;;  %s2072_s18 = smov 0   ;;  %s2074_s19 = smov 0  }
   0x6   :  { %s2076_s20 = smov 0   ;;  %s2078_s21 = smov 0  }
   0x7 LB: > { %s2093_s22 = sadd.s32 4294967295, %s2030_s21   ;;  %s1438_s23 = sadd.s32 4294967294, %s2030_s21   ;;  %s2030_s21 = sphi %s2078_s21, %s2625_s21   ;;  %s2026_s20 = sphi %s2076_s20, %s2624_s20   ;;  %s2022_s19 = sphi %s2074_s19, %s2623_s19   ;;  %s2018_s18 = sphi %s2072_s18, %s2622_s18  }
   0x8   : > { %s2097_s24 = sadd.s32 1, %s2030_s21   ;;  %s32_s25 = sadd.s32 1, %s2026_s20 }
   0x9   : > { %s29_s26 = ssub.s32 %s2030_s21, %s2097_s24  ;;  %p39_p0 = scmp.ne.s32.totalorder %s2026_s20, %s2022_s19 }
   0xa   : > { %p30_p1 = scmp.eq.s32.totalorder %s29_s26, 0  ;;  %p40_p2 = scmp.eq.s32.totalorder %s2030_s21, 0 }
   0xb   : > { %p45_p3 = scmp.ne.s32.totalorder %s2022_s19, %s2018_s18  ;;  %p46_p4 = scmp.eq.s32.totalorder %s2093_s22, 0 }
   0xc   : > { %s2109_s27 = scalar_select %p30_p1, %s2026_s20, %s32_s25  }
   0xd   : > { %p2111_p5 = por %p40_p2, %p39_p0  ;;  %p2115_p6 = por %p46_p4, %p45_p3 }
   0xe   : > { %p137_p7 = scmp.eq.s32.totalorder %s2093_s22, 1  ;;  %p143_p8 = scmp.eq.s32.totalorder %s1438_s23, 1 }
   0xf   : > { %p2613_p11 = scmp.ge.s32.totalorder %s2030_s21, 2 }
  0x10   : > { %p2120_p9 = por %p137_p7, %p39_p0  ;;  %p2124_p10 = por %p143_p8, %p45_p3 }
  0x11   : > { %191 = sbr.rel (%p2613_p11) target bundleno = 54 (0x36), region = 24  ;;  %s2132_s7 = sand.u32 (!%p2613_p11), 1, %s2026_s20  }
  0x12   : > { %s2617_s30 = scalar_select %p2120_p9, 1, 0 }
  0x13   : > { %s2618_s6 = scalar_select %p2124_p10, 1, 0 }
  0x14   : > { %s1556_s8 = sshll.u32 (!%p2613_p11), %s2030_s21, 7  ;;  %s1624_s9 = smul.u32 (!%p2613_p11), 336, %s2132_s7 }
  0x15   : > { %s2139_s12 = scalar_lea.hbm (!%p2613_p11), %s2607_s0, %s1556_s8  ;;  %s196_s15 = scalar_lea.sflag (!%p2613_p11), [#allocation3], %s2132_s7 }
  0x16   : > { %s199_s13 = scalar_lea.vmem (!%p2613_p11), [#allocation2], %s1624_s9  ;;  %s1904_s16 = scalar_lea.hbm (!%p2613_p11), %s2139_s12, 5376 }
  0x17   : > { %s206_s14 = sshll.u32 (!%p2613_p11), %s199_s13, 4  ;;  %p1905_p12 = scmp.ne.s32.totalorder (!%p2613_p11), %s2139_s12, %s1904_s16  ;;  %s2141_s14 = int_to_ptr.vmem [resolvable:$true] %s206_s14 }
  0x18   : > { %s1908_s25 = scalar_lea.hbm %s2607_s0, 10752  ;;  %p1909_p1 = scmp.lt.u32.totalorder %s2139_s12, %s2607_s0 }
  0x19   : > { %p1906_p13 = pnand %p1905_p12, %p2111_p5  ;;  %p1910_p2 = scmp.lt.u32.totalorder %s1908_s25, %s1904_s16 }
  0x1a   : > { %p1912_p4 = scmp.lt.u32.totalorder %s1904_s16, %s2139_s12 }
  0x1b   : > { %p1907_p0 = pneg %p1906_p13  ;;  %p1911_p3 = por %p1910_p2, %p1909_p1 }
  0x1d   : > { %p1913_p7 = por %p1912_p4, %p1911_p3 }
  0x1f   : > { %p1914_p8 = pnand %p1913_p7, %p1907_p0 }
  0x21   : > { %1917 = shalt.err (!%p1914_p8)
}
  0x22   : > { %s1918_s9 = scalar_lea.vmem %s2141_s14, 5376  ;;  %s2032_s10 = smov [#allocation2]  }
  0x23   : > { %p1919_p12 = scmp.ne.s32.totalorder %s2141_s14, %s1918_s9  ;;  %s1922_s11 = sshll.u32 %s2032_s10, 4  ;;  %s1923_s11 = int_to_ptr.vmem [resolvable:$false] %s1922_s11 }
  0x24   : > { %s1924_s13 = scalar_lea.vmem %s1923_s11, 10752  ;;  %p1925_p10 = scmp.lt.s32.totalorder %s2141_s14, %s1923_s11 }
  0x25   : > { %p1920_p13 = pnand %p1919_p12, %p2111_p5  ;;  %p1926_p9 = scmp.lt.s32.totalorder %s1924_s13, %s1918_s9 }
  0x27   : > { %p1921_p11 = pneg %p1920_p13  ;;  %p1927_p1 = por %p1926_p9, %p1925_p10 }
  0x29   : > { %p1928_p2 = pnand %p1927_p1, %p1921_p11 }
  0x2b   : > { %1931 = shalt.err (!%p1928_p2)
}
  0x2c   : > { %s2033_s16 = smov 256   ;;  %s2034_s17 = smov 128  }
  0x2d   : > { %s2035_s23 = smov 8   ;;  %215 = sbr.rel (!%p2111_p5) target bundleno = 54 (0x36), region = 32 }
  0x2e   : > { %1626 = dma.hbm_to_vmem [thread:$0]  (%p2111_p5), %s2139_s12, 5376, %s2141_s14, %s196_s15, %s2033_s16, %s2034_s17, %s2035_s23  }
  0x2f   : > { %s1443_s25 = sshll.u32 (%p2111_p5), %s2132_s7, 6  ;;  %s1557_s26 = sshll.u32 (%p2111_p5), %s2030_s21, 4 }
  0x30   : > { %s222_s10 = scalar_lea.vmem (%p2111_p5), %s2610_s3, %s1557_s26  ;;  %s219_s11 = scalar_lea.vmem (%p2111_p5), [#allocation5], %s1443_s25 }
  0x31   : > { %v235_v0 = vld [vmem:[%s222_s10] sm:$0xff] (%p2111_p5)  ;;  %v237_v1 = vld [vmem:[%s222_s10 + $0x8] sm:$0xff] (%p2111_p5) }
  0x32   : > { %v239_v2 = vld [vmem:[%s222_s10 + $0x20] sm:$0xff] (%p2111_p5)  ;;  %236 = vst [vmem:[%s219_s11] sm:$0xff] (%p2111_p5), %v235_v0  ;;  %238 = vst [vmem:[%s219_s11 + $0x8] sm:$0xff] (%p2111_p5), %v237_v1  ;;  %v241_v3 = vld [vmem:[%s222_s10 + $0x28] sm:$0xff] (%p2111_p5) }
  0x33   : > { %240 = vst [vmem:[%s219_s11 + $0x10] sm:$0xff] (%p2111_p5), %v239_v2  ;;  %v243_v4 = vld [vmem:[%s222_s10 + $0x40] sm:$0xff] (%p2111_p5)  ;;  %v245_v5 = vld [vmem:[%s222_s10 + $0x48] sm:$0xff] (%p2111_p5)  ;;  %242 = vst [vmem:[%s219_s11 + $0x18] sm:$0xff] (%p2111_p5), %v241_v3 }
  0x34   : > { %244 = vst [vmem:[%s219_s11 + $0x20] sm:$0xff] %v243_v4  ;;  %246 = vst [vmem:[%s219_s11 + $0x28] sm:$0xff] %v245_v5  ;;  %v247_v6 = vld [vmem:[%s222_s10 + $0x60] sm:$0xff]  ;;  %v249_v7 = vld [vmem:[%s222_s10 + $0x68] sm:$0xff] }
  0x35   : > { %248 = vst [vmem:[%s219_s11 + $0x30] sm:$0xff] %v247_v6  ;;  %250 = vst [vmem:[%s219_s11 + $0x38] sm:$0xff] %v249_v7 }
  0x36 PF: > { %p1446_p5 = scmp.ge.s32.totalorder %s2030_s21, 1  ;;  %p255_p9 = scmp.lt.s32.totalorder %s2030_s21, 3 }
  0x38   : > { %p256_p10 = pnand %p1446_p5, %p255_p9 }
  0x39   : > { %s2177_s28 = sand.u32 (!%p256_p10), 1, %s2022_s19  }
  0x3a   : > { %259 = sbr.rel (%p256_p10) target bundleno = 467 (0x1d3), region = 55  ;;  %s262_s12 = scalar_lea.sflag (!%p256_p10), [#allocation3], %s2177_s28 }
  0x3b   : > { %s1625_s7 = smul.u32 (!%p256_p10), 336, %s2177_s28 }
  0x3d   : > { %s2181_s14 = scalar_lea.vmem (!%p256_p10), [#allocation2], %s1625_s7 }
  0x41   : > { %2005 = dma.done.wait (%p2115_p6), %s262_s12, 5376  }
  0x42   : > { %2007 = vsyncadd (%p2115_p6), %s262_s12, 4294961920  ;;  %v2036_v8 = vmov 0   ;;  %v1681_v9 = vld [vmem:[%s2181_s14 + $0x4] ss:$8 sps:$4 sm:$0xff]   ;;  %v1683_v10 = vld [vmem:[%s2181_s14] ss:$8 sps:$4 sm:$0xff]  }
  0x43   : > { %983 = vmatprep.mubr.bf16.mxu0 %v2036_v8  ;;  %1679 = vset.pattern.permute.xlu0 %v2036_v8  ;;  %v1684_v11 = vld [vmem:[%s2181_s14 + $0x14] ss:$8 sps:$4 sm:$0xff]   ;;  %v1686_v12 = vld [vmem:[%s2181_s14 + $0x10] ss:$8 sps:$4 sm:$0xff]   ;;  %v1687_v13 = vld [vmem:[%s2181_s14 + $0x24] ss:$8 sps:$4 sm:$0xff]  }
  0x44   : > { %1680 = vset.pattern.permute.xlu1 %v2036_v8  ;;  %838 = vmatprep.subr.bf16.mxu1 %v1681_v9  ;;  %v1689_v14 = vld [vmem:[%s2181_s14 + $0x20] ss:$8 sps:$4 sm:$0xff]   ;;  %v1690_v15 = vld [vmem:[%s2181_s14 + $0x34] ss:$8 sps:$4 sm:$0xff]   ;;  %v1692_v16 = vld [vmem:[%s2181_s14 + $0x30] ss:$8 sps:$4 sm:$0xff]  }
  0x45   : > { %839 = vmatpush1.bf16.msra.mxu1 %v1683_v10  ;;  %v1693_v17 = vld [vmem:[%s2181_s14 + $0x44] ss:$8 sps:$4 sm:$0xff]   ;;  %v1695_v18 = vld [vmem:[%s2181_s14 + $0x40] ss:$8 sps:$4 sm:$0xff]   ;;  %v1696_v20 = vld [vmem:[%s2181_s14 + $0x54] ss:$8 sps:$4 sm:$0xff]  }
  0x46   : > { %840 = vmatprep.subr.bf16.mxu1 %v1684_v11  ;;  %v1714_v19 = vld [vmem:[%s2181_s14 + $0x104] ss:$8 sps:$4 sm:$0xff]   ;;  %v1718_v21 = vld [vmem:[%s2181_s14 + $0x100] ss:$8 sps:$4 sm:$0xff]   ;;  %v1720_v22 = vld [vmem:[%s2181_s14 + $0x114] ss:$8 sps:$4 sm:$0xff]  }
  0x47   : > { %951 = vmatprep.subr.bf16.mxu0 %v1714_v19  ;;  %v1698_v23 = vld [vmem:[%s2181_s14 + $0x50] ss:$8 sps:$4 sm:$0xff]   ;;  %v1699_v24 = vld [vmem:[%s2181_s14 + $0x64] ss:$8 sps:$4 sm:$0xff]   ;;  %v1701_v27 = vld [vmem:[%s2181_s14 + $0x60] ss:$8 sps:$4 sm:$0xff]  }
  0x48   : > { %952 = vmatpush1.bf16.msra.mxu0 %v1718_v21  ;;  %v1724_v25 = vld [vmem:[%s2181_s14 + $0x110] ss:$8 sps:$4 sm:$0xff]   ;;  %v1726_v26 = vld [vmem:[%s2181_s14 + $0x124] ss:$8 sps:$4 sm:$0xff]   ;;  %v1730_v28 = vld [vmem:[%s2181_s14 + $0x120] ss:$8 sps:$4 sm:$0xff]  }
  0x49   : > { %841 = vmatpush1.bf16.msra.mxu1 %v1686_v12  ;;  %953 = vmatprep.subr.bf16.mxu0 %v1720_v22  ;;  %v1732_v29 = vld [vmem:[%s2181_s14 + $0x134] ss:$8 sps:$4 sm:$0xff]   ;;  %v1736_v31 = vld [vmem:[%s2181_s14 + $0x130] ss:$8 sps:$4 sm:$0xff]   ;;  %v1738_v33 = vld [vmem:[%s2181_s14 + $0x144] ss:$8 sps:$4 sm:$0xff]  }
  0x4a   : > { %842 = vmatprep.subr.bf16.mxu1 %v1687_v13  ;;  %v1702_v30 = vld [vmem:[%s2181_s14 + $0x74] ss:$8 sps:$4 sm:$0xff]   ;;  %v1704_v32 = vld [vmem:[%s2181_s14 + $0x70] ss:$8 sps:$4 sm:$0xff]   ;;  %v1705_v34 = vld [vmem:[%s2181_s14 + $0x84] ss:$8 sps:$4 sm:$0xff]  }
  0x4b   : > { %v1746_v35 = vld [vmem:[%s2608_s1 + $0x4] ss:$12 sps:$4 sm:$0xff]   ;;  %v1747_v39 = vld [vmem:[%s2608_s1 + $0x8] ss:$12 sps:$4 sm:$0xff]   ;;  %vm813_vm0 = vcmask 654336   ;;  %v390_v53 = vld [vmem:[%s2609_s2 + $0x18] sm:$0xff] }
  0x4c   : > { %954 = vmatpush1.bf16.msra.mxu0 %v1724_v25  ;;  %v1742_v36 = vld [vmem:[%s2181_s14 + $0x140] ss:$8 sps:$4 sm:$0xff]   ;;  %v1708_v38 = vld [vmem:[%s2181_s14 + $0x94] ss:$8 sps:$4 sm:$0xff]   ;;  %870 = vmatprep.mubr.bf16.mxu1 %v1746_v35  ;;  %v1710_v40 = vld [vmem:[%s2181_s14 + $0x90] ss:$8 sps:$4 sm:$0xff]  }
  0x4d   : > { %843 = vmatpush1.bf16.msra.mxu1 %v1689_v14  ;;  %955 = vmatprep.subr.bf16.mxu0 %v1726_v26  ;;  %v1707_v37 = vld [vmem:[%s2181_s14 + $0x80] ss:$8 sps:$4 sm:$0xff]   ;;  %v1711_v41 = vld [vmem:[%s2181_s14 + $0xa4] ss:$8 sps:$4 sm:$0xff]   ;;  %v1716_v43 = vld [vmem:[%s2181_s14 + $0xb4] ss:$8 sps:$4 sm:$0xff]  }
  0x4e   : > { %844 = vmatprep.subr.bf16.mxu1 %v1690_v15  ;;  %v1713_v42 = vld [vmem:[%s2181_s14 + $0xa0] ss:$8 sps:$4 sm:$0xff]   ;;  %v1719_v45 = vld [vmem:[%s2181_s14 + $0xb0] ss:$8 sps:$4 sm:$0xff]   ;;  %v1722_v46 = vld [vmem:[%s2181_s14 + $0xc4] ss:$8 sps:$4 sm:$0xff]  }
  0x4f   : > { %v1750_v44 = vld [vmem:[%s2608_s1 + $0x20] ss:$12 sps:$4 sm:$0xff]   ;;  %v389_v49 = vld [vmem:[%s2609_s2 + $0x10] sm:$0xff]  ;;  %v1754_v52 = vld [vmem:[%s2608_s1 + $0x38] ss:$12 sps:$4 sm:$0xff]   ;;  %s2453_s25 = sshll.u32 %s2177_s28, 6 }
  0x50   : > { %956 = vmatpush1.bf16.msra.mxu0 %v1730_v28  ;;  %v387_v47 = vld [vmem:[%s2609_s2] sm:$0xff]  ;;  %v388_v51 = vld [vmem:[%s2609_s2 + $0x8] sm:$0xff]  ;;  %415 = vperm.xlu1 %1680, %v389_v49   ;;  %v393_v60 = vld [vmem:[%s2609_s2 + $0x30] sm:$0xff]  ;;  %s2460_s26 = scalar_lea.vmem [#allocation5], %s2453_s25  ;;  %s2476_s8 = scalar_lea.vmem [#allocation7], %s2453_s25 }
  0x51   : > { %845 = vmatpush1.bf16.msra.mxu1 %v1692_v16  ;;  %957 = vmatprep.subr.bf16.mxu0 %v1732_v29  ;;  %v1725_v48 = vld [vmem:[%s2181_s14 + $0xc0] ss:$8 sps:$4 sm:$0xff]   ;;  %v1728_v50 = vld [vmem:[%s2181_s14 + $0xd4] ss:$8 sps:$4 sm:$0xff]   ;;  %v1731_v54 = vld [vmem:[%s2181_s14 + $0xd0] ss:$8 sps:$4 sm:$0xff]  }
  0x52   : > { %846 = vmatprep.subr.bf16.mxu1 %v1693_v17  ;;  %405 = vperm.xlu0 %1679, %v387_v47   ;;  %v1734_v55 = vld [vmem:[%s2181_s14 + $0xe4] ss:$8 sps:$4 sm:$0xff]   ;;  %v1737_v58 = vld [vmem:[%s2181_s14 + $0xe0] ss:$8 sps:$4 sm:$0xff]   ;;  %v1740_v59 = vld [vmem:[%s2181_s14 + $0xf4] ss:$8 sps:$4 sm:$0xff]  }
  0x53   : > { %v391_v56 = vld [vmem:[%s2609_s2 + $0x20] sm:$0xff]  ;;  %v392_v57 = vld [vmem:[%s2609_s2 + $0x28] sm:$0xff]  ;;  %v1758_v61 = vld [vmem:[%s2608_s1 + $0x50] ss:$12 sps:$4 sm:$0xff]   ;;  %s1558_s9 = sshll.u32 %s2093_s22, 8  ;;  %s1315_s10 = sshll.u32 %s2476_s8, 4  ;;  %s2515_s10 = int_to_ptr.vmem [resolvable:$true] %s1315_s10 }
  0x54   : > { %958 = vmatpush1.bf16.msra.mxu0 %v1736_v31  ;;  %420 = vperm.xlu1 %1680, %v390_v53   ;;  %v394_v62 = vld [vmem:[%s2609_s2 + $0x38] sm:$0xff]  ;;  %v395_v0 = vld [vmem:[%s2609_s2 + $0x40] sm:$0xff]  ;;  %v396_v1 = vld [vmem:[%s2609_s2 + $0x48] sm:$0xff]  ;;  %s2503_s11 = scalar_lea.vmem [#allocation6], %s2453_s25  ;;  %s2513_s29 = scalar_lea.hbm %s2612_s5, %s1558_s9 }
  0x55   : > { %847 = vmatpush1.bf16.msra.mxu1 %v1695_v18  ;;  %959 = vmatprep.subr.bf16.mxu0 %v1738_v33  ;;  %v1743_v63 = vld [vmem:[%s2181_s14 + $0xf0] ss:$8 sps:$4 sm:$0xff]   ;;  %s1286_s15 = scalar_lea.sflag [#allocation8], %s2177_s28  ;;  %s1932_s13 = scalar_lea.vmem %s2515_s10, 1024 }
  0x56   : > { %848 = vmatprep.subr.bf16.mxu1 %v1696_v20  ;;  %410 = vperm.xlu0 %1679, %v388_v51   ;;  %v1744_v2 = vld [vmem:[%s2608_s1] ss:$12 sps:$4 sm:$0xff]   ;;  %v1748_v3 = vld [vmem:[%s2608_s1 + $0x1c] ss:$12 sps:$4 sm:$0xff]   ;;  %v397_v4 = vld [vmem:[%s2609_s2 + $0x50] sm:$0xff]  ;;  %p1933_p6 = scmp.ne.s32.totalorder %s2515_s10, %s1932_s13  ;;  %p2619_p11 = scmp.ne.s32.totalorder %s2617_s30, 0 }
  0x57   : > { %v1762_v5 = vld [vmem:[%s2608_s1 + $0x68] ss:$12 sps:$4 sm:$0xff]   ;;  %v398_v6 = vld [vmem:[%s2609_s2 + $0x58] sm:$0xff]  ;;  %v399_v7 = vld [vmem:[%s2609_s2 + $0x60] sm:$0xff]  ;;  %s2037_s16 = smov [#allocation7]  }
  0x58   : > { %960 = vmatpush1.bf16.msra.mxu0 %v1742_v36  ;;  %430 = vperm.xlu1 %1680, %v392_v57   ;;  %v400_v9 = vld [vmem:[%s2609_s2 + $0x68] sm:$0xff]  ;;  %v1751_v10 = vld [vmem:[%s2608_s1 + $0x18] ss:$12 sps:$4 sm:$0xff]   ;;  %v1752_v11 = vld [vmem:[%s2608_s1 + $0x34] ss:$12 sps:$4 sm:$0xff]   ;;  %p1934_p0 = pnand %p1933_p6, %p2619_p11  ;;  %s1936_s14 = sshll.u32 %s2037_s16, 4  ;;  %s1937_s14 = int_to_ptr.vmem [resolvable:$false] %s1936_s14 }
  0x59   : > { %849 = vmatpush1.bf16.msra.mxu1 %v1698_v23  ;;  %v401_v12 = vld [vmem:[%s2609_s2 + $0x70] sm:$0xff]  ;;  %v1766_v13 = vld [vmem:[%s2608_s1 + $0x80] ss:$12 sps:$4 sm:$0xff]   ;;  %v402_v14 = vld [vmem:[%s2609_s2 + $0x78] sm:$0xff]  ;;  %s1938_s17 = scalar_lea.vmem %s1937_s14, 2048  ;;  %p1939_p4 = scmp.lt.s32.totalorder %s2515_s10, %s1937_s14 }
  0x5a   : > { %850 = vmatprep.subr.bf16.mxu1 %v1699_v24  ;;  %425 = vperm.xlu0 %1679, %v391_v56   ;;  %v1755_v15 = vld [vmem:[%s2608_s1 + $0x30] ss:$12 sps:$4 sm:$0xff]   ;;  %v1756_v16 = vld [vmem:[%s2608_s1 + $0x4c] ss:$12 sps:$4 sm:$0xff]   ;;  %v1759_v18 = vld [vmem:[%s2608_s1 + $0x48] ss:$12 sps:$4 sm:$0xff]   ;;  %p1935_p3 = pneg %p1934_p0  ;;  %p1940_p7 = scmp.lt.s32.totalorder %s1938_s17, %s1932_s13 }
  0x5b   : > { %1516 = vmatmul.mubr.msk.bf16.vlgmr.msra.gmra.mrb[0].mxu0 %vm813_vm0, %v1747_v39  ;;  %v1770_v17 = vld [vmem:[%s2608_s1 + $0x98] ss:$12 sps:$4 sm:$0xff]   ;;  %v1774_v20 = vld [vmem:[%s2608_s1 + $0xb0] ss:$12 sps:$4 sm:$0xff]   ;;  %v1763_v21 = vld [vmem:[%s2608_s1 + $0x60] ss:$12 sps:$4 sm:$0xff]  }
  0x5c   : > { %993 = vmatprep.mubr.bf16.mxu0 %v2036_v8  ;;  %440 = vperm.xlu1 %1680, %v394_v62   ;;  %v1760_v19 = vld [vmem:[%s2608_s1 + $0x64] ss:$12 sps:$4 sm:$0xff]   ;;  %v1768_v23 = vld [vmem:[%s2608_s1 + $0x94] ss:$12 sps:$4 sm:$0xff]   ;;  %v1772_v25 = vld [vmem:[%s2608_s1 + $0xac] ss:$12 sps:$4 sm:$0xff]   ;;  %p1941_p8 = por %p1940_p7, %p1939_p4 }
  0x5d   : > { %851 = vmatpush1.bf16.msra.mxu1 %v1701_v27  ;;  %v1767_v22 = vld [vmem:[%s2608_s1 + $0x78] ss:$12 sps:$4 sm:$0xff]   ;;  %v1771_v24 = vld [vmem:[%s2608_s1 + $0x90] ss:$12 sps:$4 sm:$0xff]   ;;  %v1775_v26 = vld [vmem:[%s2608_s1 + $0xa8] ss:$12 sps:$4 sm:$0xff]  }
  0x5e   : > { %852 = vmatprep.subr.bf16.mxu1 %v1702_v30  ;;  %435 = vperm.xlu0 %1679, %v393_v60   ;;  %p1942_p12 = pnand %p1941_p8, %p1935_p3 }
  0x60   : > { %450 = vperm.xlu1 %1680, %v396_v1  }
  0x61   : > { %853 = vmatpush1.bf16.msra.mxu1 %v1704_v32 }
  0x62   : > { %854 = vmatprep.subr.bf16.mxu1 %v1705_v34  ;;  %445 = vperm.xlu0 %1679, %v395_v0  }
  0x63   : > { %1517 = vmatmul.mubr.msk.bf16.gmra.mrb[4].mxu0 %vm813_vm0, %v1750_v44 }
  0x64   : > { %1003 = vmatprep.mubr.bf16.mxu0 %v2036_v8  ;;  %460 = vperm.xlu1 %1680, %v398_v6  }
  0x65   : > { %855 = vmatpush1.bf16.msra.mxu1 %v1707_v37 }
  0x66   : > { %856 = vmatprep.subr.bf16.mxu1 %v1708_v38  ;;  %455 = vperm.xlu0 %1679, %v397_v4  }
  0x68   : > { %470 = vperm.xlu1 %1680, %v400_v9  }
  0x69   : > { %857 = vmatpush1.bf16.msra.mxu1 %v1710_v40 }
  0x6a   : > { %858 = vmatprep.subr.bf16.mxu1 %v1711_v41  ;;  %465 = vperm.xlu0 %1679, %v399_v7  }
  0x6b   : > { %1518 = vmatmul.mubr.msk.bf16.gmra.mrb[8].mxu0 %vm813_vm0, %v1754_v52 }
  0x6c   : > { %1013 = vmatprep.mubr.bf16.mxu0 %v2036_v8  ;;  %480 = vperm.xlu1 %1680, %v402_v14  }
  0x6d   : > { %859 = vmatpush1.bf16.msra.mxu1 %v1713_v42 }
  0x6e   : > { %860 = vmatprep.subr.bf16.mxu1 %v1716_v43  ;;  %475 = vperm.xlu0 %1679, %v401_v12  }
  0x71   : > { %861 = vmatpush1.bf16.msra.mxu1 %v1719_v45 }
  0x72   : > { %862 = vmatprep.subr.bf16.mxu1 %v1722_v46 }
  0x73   : > { %1519 = vmatmul.mubr.msk.bf16.gmra.mrb[12].mxu0 %vm813_vm0, %v1758_v61 }
  0x74   : > { %1023 = vmatprep.mubr.bf16.mxu0 %v2036_v8 }
  0x75   : > { %863 = vmatpush1.bf16.msra.mxu1 %v1725_v48 }
  0x76   : > { %864 = vmatprep.subr.bf16.mxu1 %v1728_v50 }
  0x79   : > { %865 = vmatpush1.bf16.msra.mxu1 %v1731_v54 }
  0x7a   : > { %866 = vmatprep.subr.bf16.mxu1 %v1734_v55 }
  0x7b   : > { %1520 = vmatmul.mubr.msk.bf16.gmra.mrb[16].mxu0 %vm813_vm0, %v1762_v5 }
  0x7c   : > { %1033 = vmatprep.mubr.bf16.mxu0 %v2036_v8 }
  0x7d   : > { %867 = vmatpush1.bf16.msra.mxu1 %v1737_v58 }
  0x7e   : > { %868 = vmatprep.subr.bf16.mxu1 %v1740_v59 }
  0x81   : > { %869 = vmatpush1.bf16.msra.mxu1 %v1743_v63 }
  0x83   : > { %1521 = vmatmul.mubr.msk.bf16.gmra.mrb[20].mxu0 %vm813_vm0, %v1766_v13 }
  0x84   : > { %871 = vmatmul.mubr.bf16.vlgmr.msra.gmra.mrb[0].mxu1 %v1744_v2  ;;  %1043 = vmatprep.mubr.bf16.mxu0 %v2036_v8 }
  0x85   : > { %880 = vmatprep.mubr.bf16.mxu1 %v1748_v3 }
  0x8b   : > { %1522 = vmatmul.mubr.msk.bf16.gmra.mrb[24].mxu0 %vm813_vm0, %v1770_v17 }
  0x8c   : > { %881 = vmatmul.mubr.bf16.gmra.mrb[4].mxu1 %v1751_v10  ;;  %1053 = vmatprep.mubr.bf16.mxu0 %v2036_v8  ;;  %v1764_v8 = vld [vmem:[%s2608_s1 + $0x7c] ss:$12 sps:$4 sm:$0xff]  }
  0x8d   : > { %890 = vmatprep.mubr.bf16.mxu1 %v1752_v11 }
  0x93   : > { %1523 = vmatmul.mubr.msk.bf16.gmra.mrb[28].mxu0 %vm813_vm0, %v1774_v20 }
  0x94   : > { %891 = vmatmul.mubr.bf16.gmra.mrb[8].mxu1 %v1755_v15 }
  0x95   : > { %900 = vmatprep.mubr.bf16.mxu1 %v1756_v16 }
  0x9c   : > { %901 = vmatmul.mubr.bf16.gmra.mrb[12].mxu1 %v1759_v18 }
  0x9d   : > { %910 = vmatprep.mubr.bf16.mxu1 %v1760_v19 }
  0xa4   : > { %911 = vmatmul.mubr.bf16.gmra.mrb[16].mxu1 %v1763_v21 }
  0xa5   : > { %920 = vmatprep.mubr.bf16.mxu1 %v1764_v8 }
  0xac   : > { %921 = vmatmul.mubr.bf16.gmra.mrb[20].mxu1 %v1767_v22 }
  0xad   : > { %930 = vmatprep.mubr.bf16.mxu1 %v1768_v23 }
  0xb4   : > { %931 = vmatmul.mubr.bf16.gmra.mrb[24].mxu1 %v1771_v24 }
  0xb5   : > { %940 = vmatprep.mubr.bf16.mxu1 %v1772_v25 }
  0xbc   : > { %941 = vmatmul.mubr.bf16.gmra.mrb[28].mxu1 %v1775_v26 }
  0xcf   : > { %v416_v55 = vpop.permute.xlu1 %415 }
  0xd1   : > { %v406_v39 = vpop.permute.xlu0 %405 }
  0xd3   : > { %v421_v2 = vpop.permute.xlu1 %420 }
  0xd5   : > { %v411_v45 = vpop.permute.xlu0 %410 }
  0xd7   : > { %v431_v24 = vpop.permute.xlu1 %430 }
  0xd9   : > { %v426_v20 = vpop.permute.xlu0 %425 }
 0x12e   : > { %v985_v27 = vpop.f32.mrb[0].mxu0 }
 0x12f   : > { %v987_v28 = vpop.f32.mrb[1].mxu0 }
 0x130   : > { %v989_v29 = vpop.f32.mrb[2].mxu0 }
 0x131   : > { %v991_v30 = vpop.f32.mrb[3].mxu0 }
 0x136   : > { %v995_v31 = vpop.f32.mrb[4].mxu0 }
 0x137   : > { %v997_v32 = vpop.f32.mrb[5].mxu0 }
 0x138   : > { %v999_v33 = vpop.f32.mrb[6].mxu0 }
 0x139   : > { %v1001_v34 = vpop.f32.mrb[7].mxu0 }
 0x13e   : > { %v1005_v35 = vpop.f32.mrb[8].mxu0 }
 0x13f   : > { %v2367_v36 = vpop.f32.mrb[9].mxu0 }
 0x140   : > { %v2369_v37 = vpop.f32.mrb[10].mxu0 }
 0x141   : > { %v2371_v38 = vpop.f32.mrb[11].mxu0 }
 0x146   : > { %v2373_v40 = vpop.f32.mrb[12].mxu0 }
 0x147   : > { %v2375_v41 = vpop.f32.mrb[13].mxu0 }
 0x148   : > { %v2377_v42 = vpop.f32.mrb[14].mxu0 }
 0x149   : > { %v2379_v43 = vpop.f32.mrb[15].mxu0 }
 0x14e   : > { %v2381_v53 = vpop.f32.mrb[16].mxu0 }
 0x14f   : > { %v2383_v57 = vpop.f32.mrb[17].mxu0 }
 0x150   : > { %v2385_v59 = vpop.f32.mrb[18].mxu0 }
 0x151   : > { %v2387_v61 = vpop.f32.mrb[19].mxu0 }
 0x156   : > { %v2389_v10 = vpop.f32.mrb[20].mxu0 }
 0x157   : > { %v872_v44 = vpop.f32.mrb[0].mxu1  ;;  %v2391_v14 = vpop.f32.mrb[21].mxu0 }
 0x158   : > { %v873_v46 = vadd.f32 %v872_v44, %v406_v39  ;;  %v874_v47 = vpop.f32.mrb[1].mxu1  ;;  %v2393_v16 = vpop.f32.mrb[22].mxu0 }
 0x159   : > { %v875_v48 = vadd.f32 %v874_v47, %v406_v39  ;;  %v876_v49 = vpop.f32.mrb[2].mxu1  ;;  %v2395_v18 = vpop.f32.mrb[23].mxu0 }
 0x15a   : > { %v986_v50 = vadd.f32 %v985_v27, %v873_v46  ;;  %v877_v51 = vadd.f32 %v876_v49, %v411_v45  ;;  %v878_v52 = vpop.f32.mrb[3].mxu1 }
 0x15b   : > { %v988_v54 = vadd.f32 %v987_v28, %v875_v48  ;;  %v879_v56 = vadd.f32 %v878_v52, %v411_v45 }
 0x15c   : > { %v990_v58 = vadd.f32 %v989_v29, %v877_v51  ;;  %v1524_v1 = vmul.f32 -1.442695, %v986_v50  ;;  %v436_v51 = vpop.permute.xlu0 %435 }
 0x15d   : > { %v992_v60 = vadd.f32 %v991_v30, %v879_v56  ;;  %v1525_v5 = vmul.f32 -1.442695, %v988_v54 }
 0x15e   : > { %v1526_v11 = vmul.f32 -1.442695, %v990_v58  ;;  %1776 = vpow2.f32 %v1524_v1 }
 0x15f   : > { %v882_v62 = vpop.f32.mrb[4].mxu1  ;;  %1778 = vpow2.f32 %v1525_v5  ;;  %v1527_v19 = vmul.f32 -1.442695, %v992_v60  ;;  %v441_v60 = vpop.permute.xlu1 %440 }
 0x160   : > { %v883_v63 = vadd.f32 %v882_v62, %v416_v55  ;;  %v884_v0 = vpop.f32.mrb[5].mxu1  ;;  %1780 = vpow2.f32 %v1526_v11 }
 0x161   : > { %v885_v3 = vadd.f32 %v884_v0, %v416_v55  ;;  %v886_v4 = vpop.f32.mrb[6].mxu1  ;;  %1782 = vpow2.f32 %v1527_v19 }
 0x162   : > { %v996_v6 = vadd.f32 %v995_v31, %v883_v63  ;;  %v887_v7 = vadd.f32 %v886_v4, %v421_v2  ;;  %v888_v9 = vpop.f32.mrb[7].mxu1  ;;  %v2397_v31 = vpop.f32.mrb[24].mxu0 }
 0x163   : > { %v998_v12 = vadd.f32 %v997_v32, %v885_v3  ;;  %v889_v13 = vadd.f32 %v888_v9, %v421_v2  ;;  %v2400_v39 = vpop.f32.mrb[25].mxu0 }
 0x164   : > { %v1000_v15 = vadd.f32 %v999_v33, %v887_v7  ;;  %v1528_v8 = vmul.f32 -1.442695, %v996_v6  ;;  %v2403_v46 = vpop.f32.mrb[26].mxu0 }
 0x165   : > { %v1002_v17 = vadd.f32 %v1001_v34, %v889_v13  ;;  %v1529_v27 = vmul.f32 -1.442695, %v998_v12 }
 0x166   : > { %v1530_v32 = vmul.f32 -1.442695, %v1000_v15  ;;  %1784 = vpow2.f32 %v1528_v8 }
 0x167   : > { %v892_v21 = vpop.f32.mrb[8].mxu1  ;;  %v1531_v44 = vmul.f32 -1.442695, %v1002_v17  ;;  %1786 = vpow2.f32 %v1529_v27  ;;  %v451_v27 = vpop.permute.xlu1 %450 }
 0x168   : > { %v893_v22 = vadd.f32 %v892_v21, %v426_v20  ;;  %v894_v23 = vpop.f32.mrb[9].mxu1  ;;  %v1777_v50 = vpop.eup %1776  ;;  %1788 = vpow2.f32 %v1530_v32 }
 0x169   : > { %v895_v25 = vadd.f32 %v894_v23, %v426_v20  ;;  %v896_v26 = vpop.f32.mrb[10].mxu1  ;;  %v1779_v54 = vpop.eup %1778  ;;  %1790 = vpow2.f32 %v1531_v44 }
 0x16a   : > { %v1006_v28 = vadd.f32 %v1005_v35, %v893_v22  ;;  %v897_v29 = vadd.f32 %v896_v26, %v431_v24  ;;  %v898_v30 = vpop.f32.mrb[11].mxu1  ;;  %v2406_v35 = vpop.f32.mrb[27].mxu0  ;;  %v1137_v4 = vadd.f32 1.0, %v1779_v54 }
 0x16b   : > { %v1008_v33 = vadd.f32 %v2367_v36, %v895_v25  ;;  %v899_v34 = vadd.f32 %v898_v30, %v431_v24  ;;  %v2409_v3 = vpop.f32.mrb[28].mxu0  ;;  %v446_v21 = vpop.permute.xlu0 %445 }
 0x16c   : > { %v1010_v45 = vadd.f32 %v2369_v37, %v897_v29  ;;  %v1532_v47 = vmul.f32 -1.442695, %v1006_v28  ;;  %v1781_v37 = vpop.eup %1780  ;;  %v2412_v7 = vpop.f32.mrb[29].mxu0 }
 0x16d   : > { %v1012_v48 = vadd.f32 %v2371_v38, %v899_v34  ;;  %v1533_v49 = vmul.f32 -1.442695, %v1008_v33  ;;  %v1136_v38 = vadd.f32 1.0, %v1777_v50  ;;  %v1783_v9 = vpop.eup %1782  ;;  %v1138_v11 = vadd.f32 1.0, %v1781_v37  ;;  %v2415_v13 = vpop.f32.mrb[30].mxu0 }
 0x16e   : > { %v1534_v36 = vmul.f32 -1.442695, %v1010_v45  ;;  %1792 = vpow2.f32 %v1532_v47  ;;  %v2418_v17 = vpop.f32.mrb[31].mxu0 }
 0x16f   : > { %v902_v52 = vpop.f32.mrb[12].mxu1  ;;  %v1535_v55 = vmul.f32 -1.442695, %v1012_v48  ;;  %1794 = vpow2.f32 %v1533_v49 }
 0x170   : > { %v903_v56 = vadd.f32 %v902_v52, %v436_v51  ;;  %v904_v58 = vpop.f32.mrb[13].mxu1  ;;  %1796 = vpow2.f32 %v1534_v36  ;;  %v1785_v19 = vpop.eup %1784 }
 0x171   : > { %v905_v62 = vadd.f32 %v904_v58, %v436_v51  ;;  %v906_v63 = vpop.f32.mrb[14].mxu1  ;;  %1798 = vpow2.f32 %v1535_v55  ;;  %v1787_v22 = vpop.eup %1786  ;;  %v1140_v26 = vadd.f32 1.0, %v1785_v19 }
 0x172   : > { %v1016_v0 = vadd.f32 %v2373_v40, %v903_v56  ;;  %v907_v1 = vadd.f32 %v906_v63, %v441_v60  ;;  %v908_v2 = vpop.f32.mrb[15].mxu1  ;;  %1800 = vrcp.f32 %v1136_v38  ;;  %v1141_v45 = vadd.f32 1.0, %v1787_v22  ;;  %v456_v58 = vpop.permute.xlu0 %455 }
 0x173   : > { %v1018_v5 = vadd.f32 %v2375_v41, %v905_v62  ;;  %v909_v6 = vadd.f32 %v908_v2, %v441_v60  ;;  %1802 = vrcp.f32 %v1137_v4  ;;  %v1139_v41 = vadd.f32 1.0, %v1783_v9 }
 0x174   : > { %v1020_v12 = vadd.f32 %v2377_v42, %v907_v1  ;;  %v1536_v15 = vmul.f32 -1.442695, %v1016_v0  ;;  %1804 = vrcp.f32 %v1138_v11  ;;  %v1789_v42 = vpop.eup %1788  ;;  %v461_v0 = vpop.permute.xlu1 %460 }
 0x175   : > { %v1022_v40 = vadd.f32 %v2379_v43, %v909_v6  ;;  %v1537_v20 = vmul.f32 -1.442695, %v1018_v5  ;;  %v1791_v29 = vpop.eup %1790  ;;  %v1142_v50 = vadd.f32 1.0, %v1789_v42 }
 0x176   : > { %v1538_v23 = vmul.f32 -1.442695, %v1020_v12  ;;  %1806 = vpow2.f32 %v1536_v15  ;;  %v1143_v52 = vadd.f32 1.0, %v1791_v29  ;;  %v466_v42 = vpop.permute.xlu0 %465 }
 0x177   : > { %v912_v8 = vpop.f32.mrb[16].mxu1  ;;  %1808 = vpow2.f32 %v1537_v20  ;;  %v1539_v30 = vmul.f32 -1.442695, %v1022_v40 }
 0x178   : > { %v913_v24 = vadd.f32 %v912_v8, %v446_v21  ;;  %v914_v25 = vpop.f32.mrb[17].mxu1  ;;  %v1793_v44 = vpop.eup %1792  ;;  %1810 = vrcp.f32 %v1139_v41 }
 0x179   : > { %v915_v28 = vadd.f32 %v914_v25, %v446_v21  ;;  %v916_v43 = vpop.f32.mrb[18].mxu1  ;;  %v1795_v49 = vpop.eup %1794  ;;  %1812 = vpow2.f32 %v1538_v23 }
 0x17a   : > { %v1026_v32 = vadd.f32 %v2381_v53, %v913_v24  ;;  %v917_v33 = vadd.f32 %v916_v43, %v451_v27  ;;  %v918_v34 = vpop.f32.mrb[19].mxu1  ;;  %v1797_v36 = vpop.eup %1796  ;;  %1814 = vrcp.f32 %v1140_v26  ;;  %v1144_v53 = vadd.f32 1.0, %v1793_v44 }
 0x17b   : > { %v1028_v47 = vadd.f32 %v2383_v57, %v915_v28  ;;  %v919_v48 = vadd.f32 %v918_v34, %v451_v27  ;;  %v1799_v55 = vpop.eup %1798  ;;  %1816 = vpow2.f32 %v1539_v30  ;;  %v1145_v56 = vadd.f32 1.0, %v1795_v49  ;;  %v471_v29 = vpop.permute.xlu1 %470 }
 0x17c   : > { %v1030_v51 = vadd.f32 %v2385_v59, %v917_v33  ;;  %1818 = vrcp.f32 %v1141_v45  ;;  %v2424_v60 = vpop.eup %1800  ;;  %v1146_v57 = vadd.f32 1.0, %v1797_v36  ;;  %v1147_v59 = vadd.f32 1.0, %v1799_v55 }
 0x17d   : > { %v1032_v54 = vadd.f32 %v2387_v61, %v919_v48  ;;  %1820 = vrcp.f32 %v1142_v50  ;;  %v2426_v38 = vpop.eup %1802  ;;  %v1540_v4 = vmul.f32 -1.442695, %v1026_v32  ;;  %v1541_v12 = vmul.f32 -1.442695, %v1028_v47 }
 0x17e   : > { %1822 = vrcp.f32 %v1143_v52  ;;  %v2428_v2 = vpop.eup %1804  ;;  %v1542_v20 = vmul.f32 -1.442695, %v1030_v51 }
 0x17f   : > { %v922_v37 = vpop.f32.mrb[20].mxu1  ;;  %1824 = vrcp.f32 %v1144_v53  ;;  %v1543_v8 = vmul.f32 -1.442695, %v1032_v54 }
 0x180   : > { %v923_v62 = vadd.f32 %v922_v37, %v456_v58  ;;  %v924_v63 = vpop.f32.mrb[21].mxu1  ;;  %v1807_v11 = vpop.eup %1806  ;;  %1826 = vrcp.f32 %v1145_v56 }
 0x181   : > { %v925_v1 = vadd.f32 %v924_v63, %v456_v58  ;;  %v926_v61 = vpop.f32.mrb[22].mxu1  ;;  %v1809_v19 = vpop.eup %1808  ;;  %1828 = vrcp.f32 %v1146_v57  ;;  %v1148_v23 = vadd.f32 1.0, %v1807_v11 }
 0x182   : > { %v1036_v5 = vadd.f32 %v2389_v10, %v923_v62  ;;  %v927_v6 = vadd.f32 %v926_v61, %v461_v0  ;;  %v928_v9 = vpop.f32.mrb[23].mxu1  ;;  %v2433_v21 = vpop.eup %1810  ;;  %1830 = vrcp.f32 %v1147_v59  ;;  %v1149_v25 = vadd.f32 1.0, %v1809_v19 }
 0x183   : > { %v1038_v15 = vadd.f32 %v2391_v14, %v925_v1  ;;  %v929_v40 = vadd.f32 %v928_v9, %v461_v0  ;;  %v1813_v10 = vpop.eup %1812  ;;  %1832 = vpow2.f32 %v1540_v4  ;;  %v481_v62 = vpop.permute.xlu1 %480 }
 0x184   : > { %v1040_v41 = vadd.f32 %v2393_v16, %v927_v6  ;;  %v2436_v24 = vpop.eup %1814  ;;  %1834 = vpow2.f32 %v1541_v12  ;;  %v1150_v43 = vadd.f32 1.0, %v1813_v10  ;;  %v1544_v33 = vmul.f32 -1.442695, %v1036_v5 }
 0x185   : > { %v1042_v22 = vadd.f32 %v2395_v18, %v929_v40  ;;  %v1817_v26 = vpop.eup %1816  ;;  %1836 = vpow2.f32 %v1542_v20  ;;  %v1545_v36 = vmul.f32 -1.442695, %v1038_v15  ;;  %v1216_v40 = vld [vmem:[%s2460_s26] sm:$0xff] }
 0x186   : > { %v2438_v16 = vpop.eup %1818  ;;  %1838 = vpow2.f32 %v1543_v8  ;;  %v1151_v48 = vadd.f32 1.0, %v1817_v26  ;;  %v1546_v63 = vmul.f32 -1.442695, %v1040_v41  ;;  %v1218_v26 = vld [vmem:[%s2460_s26 + $0x10] sm:$0xff] }
 0x187   : > { %v932_v14 = vpop.f32.mrb[24].mxu1  ;;  %v2440_v32 = vpop.eup %1820  ;;  %1840 = vrcp.f32 %v1148_v23  ;;  %v1547_v1 = vmul.f32 -1.442695, %v1042_v22 }
 0x188   : > { %v933_v27 = vadd.f32 %v932_v14, %v466_v42  ;;  %v934_v28 = vpop.f32.mrb[25].mxu1  ;;  %v2443_v47 = vpop.eup %1822  ;;  %1842 = vrcp.f32 %v1149_v25 }
 0x189   : > { %v935_v30 = vadd.f32 %v934_v28, %v466_v42  ;;  %v936_v18 = vpop.f32.mrb[26].mxu1  ;;  %v1825_v51 = vpop.eup %1824 }
 0x18a   : > { %v1046_v34 = vadd.f32 %v2397_v31, %v933_v27  ;;  %v937_v44 = vadd.f32 %v936_v18, %v471_v29  ;;  %v938_v45 = vpop.f32.mrb[27].mxu1  ;;  %v2447_v54 = vpop.eup %1826  ;;  %v1224_v22 = vmul.f32 %v1825_v51, %v1216_v40  ;;  %v1220_v18 = vld [vmem:[%s2460_s26 + $0x20] sm:$0xff] }
 0x18b   : > { %v1048_v49 = vadd.f32 %v2400_v39, %v935_v30  ;;  %v939_v50 = vadd.f32 %v938_v45, %v471_v29  ;;  %v2450_v55 = vpop.eup %1828  ;;  %v476_v39 = vpop.permute.xlu0 %475 }
 0x18c   : > { %1844 = vtanh.f32 %v1046_v34  ;;  %v1050_v52 = vadd.f32 %v2403_v46, %v937_v44  ;;  %v2455_v53 = vpop.eup %1830  ;;  %v1226_v44 = vmul.f32 %v2450_v55, %v1218_v26 }
 0x18d   : > { %1846 = vrcp.f32 %v1150_v43  ;;  %v1052_v31 = vadd.f32 %v2406_v35, %v939_v50  ;;  %v1833_v58 = vpop.eup %1832  ;;  %v1219_v43 = vld [vmem:[%s2460_s26 + $0x18] sm:$0xff] }
 0x18e   : > { %1848 = vpow2.f32 %v1544_v33  ;;  %v1835_v46 = vpop.eup %1834  ;;  %v1152_v9 = vadd.f32 1.0, %v1833_v58 }
 0x18f   : > { %1850 = vrcp.f32 %v1151_v48  ;;  %v942_v56 = vpop.f32.mrb[28].mxu1  ;;  %v1837_v0 = vpop.eup %1836  ;;  %v1153_v19 = vadd.f32 1.0, %v1835_v46 }
 0x190   : > { %1852 = vpow2.f32 %v1545_v36  ;;  %v943_v37 = vadd.f32 %v942_v56, %v476_v39  ;;  %v944_v57 = vpop.f32.mrb[29].mxu1  ;;  %v1839_v6 = vpop.eup %1838  ;;  %v1154_v42 = vadd.f32 1.0, %v1837_v0  ;;  %v1222_v56 = vld [vmem:[%s2460_s26 + $0x30] sm:$0xff] }
 0x191   : > { %1854 = vtanh.f32 %v1048_v49  ;;  %v945_v35 = vadd.f32 %v944_v57, %v476_v39  ;;  %v946_v59 = vpop.f32.mrb[30].mxu1  ;;  %v1841_v15 = vpop.eup %1840  ;;  %v1155_v27 = vadd.f32 1.0, %v1839_v6  ;;  %v1227_v49 = vmul.f32 %v2455_v53, %v1219_v43  ;;  %v1221_v53 = vld [vmem:[%s2460_s26 + $0x28] sm:$0xff] }
 0x192   : > { %1856 = vtanh.f32 %v1050_v52  ;;  %v1056_v61 = vadd.f32 %v2409_v3, %v943_v37  ;;  %v947_v4 = vadd.f32 %v946_v59, %v481_v62  ;;  %v948_v5 = vpop.f32.mrb[31].mxu1  ;;  %v2464_v41 = vpop.eup %1842 }
 0x193   : > { %1858 = vtanh.f32 %v1052_v31  ;;  %v1058_v11 = vadd.f32 %v2412_v7, %v945_v35  ;;  %v949_v12 = vadd.f32 %v948_v5, %v481_v62  ;;  %v1229_v46 = vmul.f32 %v2464_v41, %v1221_v53  ;;  %v1223_v62 = vld [vmem:[%s2460_s26 + $0x38] sm:$0xff] }
 0x194   : > { %1860 = vtanh.f32 %v1056_v61  ;;  %v1060_v20 = vadd.f32 %v2415_v13, %v947_v4  ;;  %v1217_v13 = vld [vmem:[%s2460_s26 + $0x8] sm:$0xff] }
 0x195   : > { %1862 = vpow2.f32 %v1546_v63  ;;  %v1062_v3 = vadd.f32 %v2418_v17, %v949_v12  ;;  %v1225_v30 = vmul.f32 %v2447_v54, %v1217_v13 }
 0x196   : > { %v1845_v8 = vpop.eup %1844  ;;  %1864 = vpow2.f32 %v1547_v1 }
 0x197   : > { %v2467_v7 = vpop.eup %1846  ;;  %1866 = vrcp.f32 %v1152_v9  ;;  %v1232_v10 = vmul.f32 %v1845_v8, %v2424_v60 }
 0x198   : > { %v1849_v23 = vpop.eup %1848  ;;  %1868 = vrcp.f32 %v1153_v19  ;;  %v1230_v59 = vmul.f32 %v2467_v7, %v1222_v56 }
 0x199   : > { %v2470_v25 = vpop.eup %1850  ;;  %v1240_v14 = vadd.f32 %v1232_v10, %v1224_v22  ;;  %1870 = vtanh.f32 %v1058_v11  ;;  %v1156_v29 = vadd.f32 1.0, %v1849_v23 }
 0x19a   : > { %v1853_v17 = vpop.eup %1852  ;;  %1872 = vtanh.f32 %v1060_v20  ;;  %v1231_v9 = vmul.f32 %v2470_v25, %v1223_v62 }
 0x19b   : > { %v1855_v28 = vpop.eup %1854  ;;  %1874 = vtanh.f32 %v1240_v14  ;;  %1272 = vst [vmem:[%s2476_s8] sm:$0xff] %v1240_v14  ;;  %v1157_v58 = vadd.f32 1.0, %v1853_v17 }
 0x19c   : > { %v1857_v60 = vpop.eup %1856  ;;  %v1233_v33 = vmul.f32 %v1855_v28, %v2426_v38  ;;  %1876 = vtanh.f32 %v1062_v3  ;;  %v1228_v38 = vmul.f32 %v1841_v15, %v1220_v18 }
 0x19d   : > { %v1859_v34 = vpop.eup %1858  ;;  %1878 = vrcp.f32 %v1154_v42  ;;  %v1234_v45 = vmul.f32 %v1857_v60, %v2428_v2 }
 0x19e   : > { %v1861_v48 = vpop.eup %1860  ;;  %1880 = vrcp.f32 %v1155_v27  ;;  %v1241_v50 = vadd.f32 %v1233_v33, %v1225_v30  ;;  %v1235_v51 = vmul.f32 %v1859_v34, %v2433_v21 }
 0x19f   : > { %v1863_v36 = vpop.eup %1862  ;;  %1882 = vrcp.f32 %v1156_v29  ;;  %v1242_v52 = vadd.f32 %v1234_v45, %v1226_v44  ;;  %v1236_v54 = vmul.f32 %v1861_v48, %v2436_v24 }
 0x1a0   : > { %v1865_v31 = vpop.eup %1864  ;;  %1884 = vtanh.f32 %v1241_v50  ;;  %1273 = vst [vmem:[%s2476_s8 + $0x8] sm:$0xff] %v1241_v50  ;;  %v1243_v2 = vadd.f32 %v1235_v51, %v1227_v49  ;;  %v1158_v57 = vadd.f32 1.0, %v1863_v36 }
 0x1a1   : > { %v1867_v55 = vpop.eup %1866  ;;  %1886 = vtanh.f32 %v1242_v52  ;;  %1274 = vst [vmem:[%s2476_s8 + $0x10] sm:$0xff] %v1242_v52  ;;  %v1244_v39 = vadd.f32 %v1236_v54, %v1228_v38  ;;  %v1159_v61 = vadd.f32 1.0, %v1865_v31 }
 0x1a2   : > { %v1869_v21 = vpop.eup %1868  ;;  %1888 = vtanh.f32 %v1243_v2  ;;  %1275 = vst [vmem:[%s2476_s8 + $0x18] sm:$0xff] %v1243_v2 }
 0x1a3   : > { %v1871_v37 = vpop.eup %1870  ;;  %1890 = vtanh.f32 %v1244_v39  ;;  %1276 = vst [vmem:[%s2476_s8 + $0x20] sm:$0xff] %v1244_v39 }
 0x1a4   : > { %v1873_v24 = vpop.eup %1872  ;;  %v1237_v63 = vmul.f32 %v1871_v37, %v2438_v16  ;;  %1892 = vrcp.f32 %v1157_v58 }
 0x1a5   : > { %v1875_v35 = vpop.eup %1874  ;;  %v1238_v0 = vmul.f32 %v1873_v24, %v2440_v32  ;;  %1894 = vrcp.f32 %v1158_v57 }
 0x1a6   : > { %v1877_v1 = vpop.eup %1876  ;;  %v1256_v4 = vmul.f32 %v1875_v35, %v1867_v55  ;;  %v1245_v5 = vadd.f32 %v1237_v63, %v1229_v46 }
 0x1a7   : > { %v1879_v6 = vpop.eup %1878  ;;  %v1246_v16 = vadd.f32 %v1238_v0, %v1230_v59  ;;  %v1239_v11 = vmul.f32 %v1877_v1, %v2443_v47 }
 0x1a8   : > { %v1881_v12 = vpop.eup %1880  ;;  %1264 = vst [vmem:[%s2503_s11] sm:$0xff] %v1256_v4  ;;  %1896 = vtanh.f32 %v1245_v5  ;;  %1277 = vst [vmem:[%s2476_s8 + $0x28] sm:$0xff] %v1245_v5 }
 0x1a9   : > { %v1883_v32 = vpop.eup %1882  ;;  %1898 = vtanh.f32 %v1246_v16  ;;  %1278 = vst [vmem:[%s2476_s8 + $0x30] sm:$0xff] %v1246_v16  ;;  %v1247_v15 = vadd.f32 %v1239_v11, %v1231_v9 }
 0x1aa   : > { %v1885_v47 = vpop.eup %1884  ;;  %1900 = vrcp.f32 %v1159_v61 }
 0x1ab   : > { %v1887_v40 = vpop.eup %1886  ;;  %v1257_v19 = vmul.f32 %v1885_v47, %v1869_v21  ;;  %1902 = vtanh.f32 %v1247_v15  ;;  %1279 = vst [vmem:[%s2476_s8 + $0x38] sm:$0xff] %v1247_v15 }
 0x1ac   : > { %v1889_v20 = vpop.eup %1888  ;;  %v1258_v41 = vmul.f32 %v1887_v40, %v1879_v6 }
 0x1ad   : > { %1945 = shalt.err (!%p1942_p12)
}
 0x1ae   : > { %s1946_s23 = scalar_lea.hbm %s2513_s29, 1024  ;;  %s1950_s8 = scalar_lea.hbm %s2612_s5, 2048 }
 0x1af   : > { %p1947_p13 = scmp.ne.s32.totalorder %s2513_s29, %s1946_s23  ;;  %p1951_p5 = scmp.lt.u32.totalorder %s2513_s29, %s2612_s5 }
 0x1b0   : > { %p1952_p9 = scmp.lt.u32.totalorder %s1950_s8, %s1946_s23  ;;  %p1954_p6 = scmp.lt.u32.totalorder %s1946_s23, %s2513_s29 }
 0x1b1   : > { %p1948_p1 = pnand %p1947_p13, %p2619_p11 }
 0x1b2   : > { %p1953_p10 = por %p1952_p9, %p1951_p5 }
 0x1b3   : > { %p1949_p2 = pneg %p1948_p1 }
 0x1b4   : > { %p1955_p0 = por %p1954_p6, %p1953_p10 }
 0x1b6   : > { %p1956_p3 = pnand %p1955_p0, %p1949_p2 }
 0x1b8   : > { %1959 = shalt.err (!%p1956_p3)
}
 0x1b9   : > { %s2038_s13 = smov 256   ;;  %s2039_s16 = smov 512   ;;  %v1891_v3 = vpop.eup %1890  ;;  %1265 = vst [vmem:[%s2503_s11 + $0x8] sm:$0xff] %v1257_v19  ;;  %v1259_v8 = vmul.f32 %v1889_v20, %v1881_v12  ;;  %1266 = vst [vmem:[%s2503_s11 + $0x10] sm:$0xff] %v1258_v41 }
 0x1ba   : > { %s2040_s14 = smov 16   ;;  %v1260_v7 = vmul.f32 %v1891_v3, %v1883_v32  ;;  %v1893_v22 = vpop.eup %1892  ;;  %s1299_s17 = sshll.u32 %s2503_s11, 4  ;;  %s2559_s17 = int_to_ptr.vmem [resolvable:$true] %s1299_s17 }
 0x1bb   : > { %1629 = dma.vmem_to_hbm [thread:$0]  (%p2619_p11), %s2515_s10, 1024, %s2513_s29, %s1286_s15, %s2038_s13, %s2039_s16, %s2040_s14   ;;  %v1895_v10 = vpop.eup %1894 }
 0x1bc   : > { %1267 = vst [vmem:[%s2503_s11 + $0x18] sm:$0xff] %v1259_v8  ;;  %1268 = vst [vmem:[%s2503_s11 + $0x20] sm:$0xff] %v1260_v7  ;;  %v1897_v23 = vpop.eup %1896  ;;  %s2557_s15 = scalar_lea.hbm %s2611_s4, %s1558_s9  ;;  %s1281_s23 = scalar_lea.sflag [#allocation4], %s2177_s28 }
 0x1bd   : > { %v1899_v25 = vpop.eup %1898  ;;  %v1261_v13 = vmul.f32 %v1897_v23, %v1893_v22  ;;  %s1960_s25 = scalar_lea.vmem %s2559_s17, 1024  ;;  %s2041_s26 = smov [#allocation6]  }
 0x1be   : > { %v1901_v42 = vpop.eup %1900  ;;  %v1262_v14 = vmul.f32 %v1899_v25, %v1895_v10  ;;  %p1961_p4 = scmp.ne.s32.totalorder %s2559_s17, %s1960_s25  ;;  %s1964_s8 = sshll.u32 %s2041_s26, 4  ;;  %s1965_s8 = int_to_ptr.vmem [resolvable:$false] %s1964_s8 }
 0x1bf   : > { %v1903_v17 = vpop.eup %1902  ;;  %1269 = vst [vmem:[%s2503_s11 + $0x28] sm:$0xff] %v1261_v13  ;;  %s1966_s22 = scalar_lea.vmem %s1965_s8, 2048  ;;  %p1967_p12 = scmp.lt.s32.totalorder %s2559_s17, %s1965_s8 }
 0x1c0   : > { %1270 = vst [vmem:[%s2503_s11 + $0x30] sm:$0xff] %v1262_v14  ;;  %v1263_v26 = vmul.f32 %v1903_v17, %v1901_v42  ;;  %p1962_p7 = pnand %p1961_p4, %p2619_p11  ;;  %p1968_p13 = scmp.lt.s32.totalorder %s1966_s22, %s1960_s25 }
 0x1c2   : > { %1271 = vst [vmem:[%s2503_s11 + $0x38] sm:$0xff] %v1263_v26  ;;  %p1963_p8 = pneg %p1962_p7  ;;  %p1969_p1 = por %p1968_p13, %p1967_p12 }
 0x1c4   : > { %p1970_p2 = pnand %p1969_p1, %p1963_p8 }
 0x1c6   : > { %1973 = shalt.err (!%p1970_p2)
}
 0x1c7   : > { %s1974_s9 = scalar_lea.hbm %s2557_s15, 1024  ;;  %s1978_s12 = scalar_lea.hbm %s2611_s4, 2048 }
 0x1c8   : > { %p1975_p5 = scmp.ne.s32.totalorder %s2557_s15, %s1974_s9  ;;  %p1979_p6 = scmp.lt.u32.totalorder %s2557_s15, %s2611_s4 }
 0x1c9   : > { %p1980_p0 = scmp.lt.u32.totalorder %s1978_s12, %s1974_s9  ;;  %p1982_p4 = scmp.lt.u32.totalorder %s1974_s9, %s2557_s15 }
 0x1ca   : > { %p1976_p9 = pnand %p1975_p5, %p2619_p11 }
 0x1cb   : > { %p1981_p3 = por %p1980_p0, %p1979_p6 }
 0x1cc   : > { %p1977_p10 = pneg %p1976_p9 }
 0x1cd   : > { %p1983_p7 = por %p1982_p4, %p1981_p3 }
 0x1cf   : > { %p1984_p8 = pnand %p1983_p7, %p1977_p10 }
 0x1d1   : > { %1987 = shalt.err (!%p1984_p8)
}
 0x1d2   : > { %1628 = dma.vmem_to_hbm [thread:$0]  (%p2619_p11), %s2559_s17, 1024, %s2557_s15, %s1281_s23, %s2038_s13, %s2039_s16, %s2040_s14  }
 0x1d3 PF: > { %s1330_s25 = sand.u32 1, %s2018_s18   ;;  %p2620_p12 = scmp.ne.s32.totalorder %s2618_s6, 0 }
 0x1d4   : > { %p2621_p13 = scmp.ge.s32.totalorder %s2030_s21, 2  ;;  %s1331_s26 = scalar_lea.sflag [#allocation4], %s1330_s25 }
 0x1d6   : > { %p1633_p1 = pnand %p2621_p13, %p2620_p12 }
 0x1d8   : > { %2009 = dma.done.wait (!%p1633_p1), %s1331_s26, 1024  }
 0x1d9   : > { %2011 = vsyncadd (!%p1633_p1), %s1331_s26, 4294966272  ;;  %s1340_s30 = scalar_lea.sflag [#allocation8], %s1330_s25 }
 0x1da   : > { %2013 = dma.done.wait (!%p1633_p1), %s1340_s30, 1024  }
 0x1db   : > { %2015 = vsyncadd (!%p1633_p1), %s1340_s30, 4294966272  ;;  %p22_p11 = scmp.ge.s32.totalorder %s2097_s24, 4   ;;  %s2622_s18 = smov %s2022_s19 }
 0x1dc   : > { %s2623_s19 = smov %s2026_s20  ;;  %s2624_s20 = smov %s2109_s27 }
 0x1dd   : > { %s2625_s21 = smov %s2097_s24  ;;  %24 = sbr.rel (!%p22_p11) target bundleno = 7 (0x7), region = 129 }
 0x1e4   :  { %1345 = vsyncpa [#allocation3], 1 }
 0x1e5   :  { %1347 = vsyncpa [#allocation3 + $0x1], 1 }
 0x1e6   :  { %1348 = vsyncpa [#allocation4], 1 }
 0x1e7   :  { %1350 = vsyncpa [#allocation4 + $0x1], 1 }
 0x1e8   :  { %1351 = vsyncpa [#allocation8], 1 }
 0x1e9   :  { %1353 = vsyncpa [#allocation8 + $0x1], 1 }

</bundles_post_ra>
